<compile_context>
chip_gen: v6e
topology: v6e:2x2x1
jax: 0.10.0
libtpu: 0.0.40
codegen_flags: <defaults>
</compile_context>

<pallas_src>
import jax
import jax.numpy as jnp
from jax.experimental import pallas as pl
from jax.experimental.pallas import tpu as pltpu


def _bias_only_kernel(bias_ref, out_ref):
    # Output is aliased to the input, so this is effectively a no-op write into
    # the same buffer; kept so the kernel body is non-empty and well-defined.
    out_ref[...] = bias_ref[...]


def bias_only_forward(x, bias):
    """Pallas equivalent of BiasOnly.forward: returns `bias`, ignoring `x`."""
    del x  # the PyTorch forward never reads x
    features = bias.shape[0]
    # Lane-dense 2-D view: last dim maps to the 128-wide lane axis.
    bias_2d = bias.reshape(1, features)

    out = pl.pallas_call(
        _bias_only_kernel,
        out_shape=jax.ShapeDtypeStruct((1, features), bias.dtype),
        # Gridless call: whole array as a single VMEM-resident block, no
        # prefetch/writeback pipeline machinery for a degenerate grid.
        in_specs=[pl.BlockSpec(memory_space=pltpu.MemorySpace.VMEM)],
        out_specs=pl.BlockSpec(memory_space=pltpu.MemorySpace.VMEM),
        # Alias input 0 -> output 0: no independent output HBM buffer / copy.
        input_output_aliases={0: 0},
        # Advisory: this call costs nothing; don't perturb XLA scheduling.
        cost_estimate=pl.CostEstimate(
            flops=0,
            transcendentals=0,
            bytes_accessed=2 * features * bias.dtype.itemsize,
        ),
    )(bias_2d)
    return out.reshape(features)


if __name__ == "__main__":
    key = jax.random.PRNGKey(0)

    features = 32
    # Deterministic parameter init: nn.Parameter(torch.zeros(features))
    bias = jnp.zeros((features,), dtype=jnp.float32)

    # Example input (NCHW) — unused by the forward pass, just like in PyTorch.
    x = jax.random.normal(key, (2, 4, 16, 16), dtype=jnp.float32)

    fwd = jax.jit(bias_only_forward)
    out = jax.block_until_ready(fwd(x, bias))

    assert out.shape == (features,)
    assert out.dtype == jnp.float32
    assert bool(jnp.all(out == bias))

    print("KERNEL_OK")
</pallas_src>

<mosaic_0001>
module attributes {stable_mosaic.version = 11 : i64} {
  func.func @_bias_only_kernel(%arg0: memref<1x32xf32, #tpu.memory_space<vmem>>, %arg1: memref<1x32xf32, #tpu.memory_space<vmem>>) attributes {dimension_semantics = [], scalar_prefetch = 0 : i64, scratch_operands = 0 : i64, tpu.core_type = #tpu.core_type<tc>} {
    %c0 = arith.constant 0 : index
    %c0_0 = arith.constant 0 : index
    %0 = vector.load %arg0[%c0, %c0_0] : memref<1x32xf32, #tpu.memory_space<vmem>>, vector<1x32xf32>
    %c0_1 = arith.constant 0 : index
    %c0_2 = arith.constant 0 : index
    %1 = vector.load %arg1[%c0_1, %c0_2] : memref<1x32xf32, #tpu.memory_space<vmem>>, vector<1x32xf32>
    tpu.vector_store %arg1[%c0_1, %c0_2], %0 {strides = array<i32>} : memref<1x32xf32, #tpu.memory_space<vmem>>, vector<1x32xf32>,
    return
  }
}

</mosaic_0001>

<bundles_post_ra>
// kernel: bias_only_forward.1
= control target key start
LH: loop header
LB: loop body
LE: loop exit
PB: predicated region body
PF: predicated region fallthrough
CT: control target
= control target key end

     0   :  { %vm9_vm0 = vcmask 253952   ;;  %s31_s0 = inlined_call_operand.vmem [shape: f32[1,32], index: 0, kind: input, shape index: {}, may-alias: {0,1}]   ;;  %s32_s1 = inlined_call_operand.vmem [shape: f32[1,32], index: 1, kind: output, shape index: {}, may-alias: {0,1}]  }
   0x1   :  { %v8_v0 = vld [vmem:[%s31_s0] sm:$0x1] }
   0x2   :  { %10 = vst.msk [vmem:[%s32_s1] sm:$0x1] %vm9_vm0, %v8_v0 }

</bundles_post_ra>
